<compile_context>
chip_gen: v7x
topology: tpu7x:2x2x1
jax: 0.10.0
libtpu: 0.0.40
codegen_flags: <defaults>
</compile_context>

<pallas_src>
import jax
import jax.numpy as jnp
from jax.experimental import pallas as pl
from jax.experimental.pallas import tpu as pltpu
import numpy as np


def critic_kernel(x_ref, p_ref, b2_ref, o_ref):
    # x_ref: [tb, in_dim] activations (streamed)
    # p_ref: [in_dim + 2, hid] resident params -> rows 0..in_dim-1 = w1,
    #        row in_dim = b1, row in_dim+1 = w2^T
    # b2_ref: [1] scalar bias in SMEM
    in_dim = x_ref.shape[1]
    x = x_ref[...]                                   # [tb, in_dim] f32
    b1 = p_ref[in_dim:in_dim + 1, :]                 # [1, hid]
    w2 = p_ref[in_dim + 1:in_dim + 2, :]             # [1, hid]

    # Layer 1 on the VPU: unrolled broadcast-FMA over the tiny contraction dim.
    # XLU does the [tb,1] lane-broadcast of each input column, VALU does the FMAs.
    h = b1 + x[:, 0:1] * p_ref[0:1, :]
    for k in range(1, in_dim):
        h = h + x[:, k:k + 1] * p_ref[k:k + 1, :]
    h = jnp.maximum(h, 0.0)

    # Layer 2 (N=1): VPU multiply + XLU cross-lane reduce; scalar bias from SMEM.
    v = jnp.sum(h * w2, axis=-1, keepdims=True)
    o_ref[...] = (v + b2_ref[0]).astype(o_ref.dtype)


def _round_up(x, m):
    return ((x + m - 1) // m) * m


def critic_forward(state, params, b2, *, block_b=2048):
    """value = relu(state @ w1 + b1) @ w2 + b2, params packed as [in_dim+2, hid]."""
    B, in_dim = state.shape
    hid = params.shape[1]
    assert params.shape[0] == in_dim + 2

    # Batch tile: multiple of 8 (sublane), capped by block_b, and capped at
    # ceil(B/2) so the grid has >= 2 steps whenever B > 8 (v7x dual-TC sharding).
    tb = min(block_b, max(8, _round_up(pl.cdiv(B, 2), 8)))
    grid = pl.cdiv(B, tb)

    out = pl.pallas_call(
        critic_kernel,
        out_shape=jax.ShapeDtypeStruct((B, 1), jnp.float32),
        grid_spec=pltpu.PrefetchScalarGridSpec(
            num_scalar_prefetch=0,
            grid=(grid,),
            in_specs=[
                pl.BlockSpec((tb, in_dim), lambda i: (i, 0)),        # activation stream
                pl.BlockSpec((in_dim + 2, hid), lambda i: (0, 0)),   # resident param blob
                pl.BlockSpec(memory_space=pltpu.MemorySpace.SMEM),   # scalar b2 (SMEM)
            ],
            out_specs=pl.BlockSpec((tb, 1), lambda i: (i, 0)),
        ),
        compiler_params=pltpu.CompilerParams(
            dimension_semantics=("parallel",),
        ),
    )(state, params, b2)
    return out


def critic_reference(state, params, b2):
    in_dim = state.shape[1]
    w1 = params[:in_dim, :]
    b1 = params[in_dim:in_dim + 1, :]
    w2 = params[in_dim + 1:in_dim + 2, :]
    h = jnp.maximum(state @ w1 + b1, 0.0)
    return jnp.sum(h * w2, axis=-1, keepdims=True) + b2[0]


def init_params(key, in_dim, hidden_dim=128):
    # Mirrors the PyTorch module's init:
    #  - hidden layer: default nn.Linear init U(-1/sqrt(in_dim), 1/sqrt(in_dim))
    #  - out layer: init_uniformly -> small uniform U(-3e-3, 3e-3)
    # Packed host-side into one resident blob: [w1 ; b1 ; w2^T] of shape [in_dim+2, hid].
    k1, k2, k3, k4 = jax.random.split(key, 4)
    bound1 = 1.0 / np.sqrt(in_dim)
    w1 = jax.random.uniform(k1, (in_dim, hidden_dim), jnp.float32, -bound1, bound1)
    b1 = jax.random.uniform(k2, (1, hidden_dim), jnp.float32, -bound1, bound1)
    init_w = 3e-3
    w2_t = jax.random.uniform(k3, (1, hidden_dim), jnp.float32, -init_w, init_w)
    b2 = jax.random.uniform(k4, (1,), jnp.float32, -init_w, init_w)
    params = jnp.concatenate([w1, b1, w2_t], axis=0)  # [in_dim+2, hid]
    return params, b2


if __name__ == "__main__":
    key = jax.random.PRNGKey(0)
    k_x, k_p, k_big = jax.random.split(key, 3)

    in_dim = 4  # e.g. 4-dim env observation
    params, b2 = init_params(k_p, in_dim)

    # Small batch, as in the original A2C usage (fixed-overhead bound; see notes above).
    B = 8
    state = jax.random.normal(k_x, (B, in_dim), dtype=jnp.float32)
    value = jax.block_until_ready(critic_forward(state, params, b2))
    ref = critic_reference(state, params, b2)
    assert value.shape == (B, 1)
    np.testing.assert_allclose(np.asarray(value), np.asarray(ref), rtol=1e-4, atol=1e-5)

    # Larger, non-multiple batch: exercises the partial final block (no wrapper pad),
    # the 2-step "parallel" grid, and the masked output stores.
    B2 = 1000
    state2 = jax.random.normal(k_big, (B2, in_dim), dtype=jnp.float32)
    value2 = jax.block_until_ready(critic_forward(state2, params, b2))
    ref2 = critic_reference(state2, params, b2)
    assert value2.shape == (B2, 1)
    np.testing.assert_allclose(np.asarray(value2), np.asarray(ref2), rtol=1e-4, atol=1e-5)

    print("KERNEL_OK")
</pallas_src>

<mosaic_0001>
module attributes {stable_mosaic.version = 11 : i64} {
  func.func @critic_kernel(%arg0: i32, %arg1: memref<8x4xf32, #tpu.memory_space<vmem>>, %arg2: memref<6x128xf32, #tpu.memory_space<vmem>>, %arg3: memref<1xf32, #tpu.memory_space<smem>>, %arg4: memref<8x1xf32, #tpu.memory_space<vmem>>) attributes {dimension_semantics = [#tpu.dimension_semantics<parallel>], iteration_bounds = array<i64: 1>, scalar_prefetch = 0 : i64, scratch_operands = 0 : i64, tpu.core_type = #tpu.core_type<tc>, window_params = [{transform_indices = @transform_0, window_bounds = array<i64: 8, 4>}, {pipeline_mode = #tpu.pipeline_mode<synchronous>, transform_indices = @transform_1, window_bounds = array<i64: 6, 128>}, {transform_indices = @transform_2, window_bounds = array<i64: 1>}, {transform_indices = @transform_3, window_bounds = array<i64: 8, 1>}]} {
    %c0 = arith.constant 0 : index
    %c0_0 = arith.constant 0 : index
    %0 = vector.load %arg1[%c0, %c0_0] : memref<8x4xf32, #tpu.memory_space<vmem>>, vector<8x4xf32>
    %c4 = arith.constant 4 : index
    %c0_1 = arith.constant 0 : index
    %1 = vector.load %arg2[%c4, %c0_1] : memref<6x128xf32, #tpu.memory_space<vmem>>, vector<1x128xf32>
    %c5 = arith.constant 5 : index
    %c0_2 = arith.constant 0 : index
    %2 = vector.load %arg2[%c5, %c0_2] : memref<6x128xf32, #tpu.memory_space<vmem>>, vector<1x128xf32>
    %3 = vector.extract_strided_slice %0 {offsets = [0, 0], sizes = [8, 1], strides = [1, 1]} : vector<8x4xf32> to vector<8x1xf32>
    %c0_3 = arith.constant 0 : index
    %c0_4 = arith.constant 0 : index
    %4 = vector.load %arg2[%c0_3, %c0_4] : memref<6x128xf32, #tpu.memory_space<vmem>>, vector<1x128xf32>
    %5 = vector.broadcast %3 : vector<8x1xf32> to vector<8x128xf32>
    %6 = vector.broadcast %4 : vector<1x128xf32> to vector<8x128xf32>
    %7 = arith.mulf %5, %6 : vector<8x128xf32>
    %8 = vector.broadcast %1 : vector<1x128xf32> to vector<8x128xf32>
    %9 = arith.addf %8, %7 : vector<8x128xf32>
    %10 = vector.extract_strided_slice %0 {offsets = [0, 1], sizes = [8, 1], strides = [1, 1]} : vector<8x4xf32> to vector<8x1xf32>
    %c1 = arith.constant 1 : index
    %c0_5 = arith.constant 0 : index
    %11 = vector.load %arg2[%c1, %c0_5] : memref<6x128xf32, #tpu.memory_space<vmem>>, vector<1x128xf32>
    %12 = vector.broadcast %10 : vector<8x1xf32> to vector<8x128xf32>
    %13 = vector.broadcast %11 : vector<1x128xf32> to vector<8x128xf32>
    %14 = arith.mulf %12, %13 : vector<8x128xf32>
    %15 = arith.addf %9, %14 : vector<8x128xf32>
    %16 = vector.extract_strided_slice %0 {offsets = [0, 2], sizes = [8, 1], strides = [1, 1]} : vector<8x4xf32> to vector<8x1xf32>
    %c2 = arith.constant 2 : index
    %c0_6 = arith.constant 0 : index
    %17 = vector.load %arg2[%c2, %c0_6] : memref<6x128xf32, #tpu.memory_space<vmem>>, vector<1x128xf32>
    %18 = vector.broadcast %16 : vector<8x1xf32> to vector<8x128xf32>
    %19 = vector.broadcast %17 : vector<1x128xf32> to vector<8x128xf32>
    %20 = arith.mulf %18, %19 : vector<8x128xf32>
    %21 = arith.addf %15, %20 : vector<8x128xf32>
    %22 = vector.extract_strided_slice %0 {offsets = [0, 3], sizes = [8, 1], strides = [1, 1]} : vector<8x4xf32> to vector<8x1xf32>
    %c3 = arith.constant 3 : index
    %c0_7 = arith.constant 0 : index
    %23 = vector.load %arg2[%c3, %c0_7] : memref<6x128xf32, #tpu.memory_space<vmem>>, vector<1x128xf32>
    %24 = vector.broadcast %22 : vector<8x1xf32> to vector<8x128xf32>
    %25 = vector.broadcast %23 : vector<1x128xf32> to vector<8x128xf32>
    %26 = arith.mulf %24, %25 : vector<8x128xf32>
    %27 = arith.addf %21, %26 : vector<8x128xf32>
    %cst = arith.constant 0.000000e+00 : f32
    %28 = vector.broadcast %cst : f32 to vector<8x128xf32>
    %29 = arith.maximumf %27, %28 : vector<8x128xf32>
    %30 = vector.broadcast %2 : vector<1x128xf32> to vector<8x128xf32>
    %31 = arith.mulf %29, %30 : vector<8x128xf32>
    %cst_8 = arith.constant dense<0.000000e+00> : vector<8xf32>
    %32 = vector.multi_reduction <add>, %31, %cst_8 [1] : vector<8x128xf32> to vector<8xf32>
    %33 = vector.shape_cast %32 : vector<8xf32> to vector<8x1xf32>
    %c0_9 = arith.constant 0 : index
    %34 = memref.load %arg3[%c0_9] : memref<1xf32, #tpu.memory_space<smem>>
    %35 = vector.broadcast %34 : f32 to vector<8x1xf32>
    %36 = arith.addf %33, %35 : vector<8x1xf32>
    %c0_10 = arith.constant 0 : index
    %c0_11 = arith.constant 0 : index
    %37 = vector.load %arg4[%c0_10, %c0_11] : memref<8x1xf32, #tpu.memory_space<vmem>>, vector<8x1xf32>
    tpu.vector_store %arg4[%c0_10, %c0_11], %36 {strides = array<i32>} : memref<8x1xf32, #tpu.memory_space<vmem>>, vector<8x1xf32>,
    return
  }
  func.func @transform_0(%arg0: i32) -> (i32, i32) {
    %c0_i32 = arith.constant 0 : i32
    %c0_i32_0 = arith.constant 0 : i32
    return %arg0, %c0_i32 : i32, i32
  }
  func.func @transform_1(%arg0: i32) -> (i32, i32) {
    %c0_i32 = arith.constant 0 : i32
    %c0_i32_0 = arith.constant 0 : i32
    %c0_i32_1 = arith.constant 0 : i32
    return %c0_i32, %c0_i32_0 : i32, i32
  }
  func.func @transform_2(%arg0: i32) -> i32 {
    %c0_i32 = arith.constant 0 : i32
    %c0_i32_0 = arith.constant 0 : i32
    return %c0_i32 : i32
  }
  func.func @transform_3(%arg0: i32) -> (i32, i32) {
    %c0_i32 = arith.constant 0 : i32
    %c0_i32_0 = arith.constant 0 : i32
    return %arg0, %c0_i32 : i32, i32
  }
}

</mosaic_0001>

<bundles_post_ra>
// kernel: tpu_custom_call.1
= control target key start
LH: loop header
LB: loop body
LE: loop exit
PB: predicated region body
PF: predicated region fallthrough
CT: control target
= control target key end

     0   :  { %v99_v0 = vmov 0   ;;  %v100_v2 = vmov 2   ;;  %v101_v3 = vmov 1   ;;  %v102_v4 = vmov 3   ;;  %s150_s0 = inlined_call_operand.vmem [shape: f32[8,4], index: 0, kind: input, shape index: {}]   ;;  %s151_s1 = inlined_call_operand.vmem [shape: f32[6,128], index: 1, kind: input, shape index: {}]   ;;  %s152_s2 = inlined_call_operand.<no memory space> [shape: f32[1], index: 2, kind: input, shape index: {}]   ;;  %s153_s3 = inlined_call_operand.vmem [shape: f32[8,1], index: 3, kind: output, shape index: {}]  }
   0x1   :  { %94 = vset.pattern.permute.xlu0 %v99_v0  ;;  %v15_v1 = vld [vmem:[%s150_s0] sm:$0xff]  ;;  %96 = vset.pattern.permute.xlu1 %v100_v2  ;;  %v76_v25 = vstv %s152_s2  ;;  %vm78_vm0 = vcmask 7168  }
   0x2   :  { %21 = vperm.xlu0 %94, %v15_v1   ;;  %47 = vperm.xlu1 %96, %v15_v1   ;;  %v84_v5 = vld [vmem:[%s151_s1] ss:$0 sm:$0xff]  ;;  %v85_v9 = vld [vmem:[%s151_s1 + $0x4] ss:$0 sm:$0xff]  ;;  %v86_v10 = vld [vmem:[%s151_s1 + $0x1] ss:$0 sm:$0xff] }
   0x3   :  { %v87_v11 = vld [vmem:[%s151_s1 + $0x2] ss:$0 sm:$0xff]  ;;  %v88_v13 = vld [vmem:[%s151_s1 + $0x3] ss:$0 sm:$0xff]  ;;  %v89_v22 = vld [vmem:[%s151_s1 + $0x5] ss:$0 sm:$0xff] }
   0x6   :  { %95 = vset.pattern.permute.xlu0 %v101_v3  ;;  %97 = vset.pattern.permute.xlu1 %v102_v4 }
   0x7   :  { %36 = vperm.xlu0 %95, %v15_v1   ;;  %58 = vperm.xlu1 %97, %v15_v1  }
   0xb   :  { %98 = vset.pattern.permute.xlu0 %v102_v4 }
  0x81   :  { %v22_v6 = vpop.permute.xlu0 %21  ;;  %v48_v7 = vpop.permute.xlu1 %47 }
  0x82   :  { %v28_v8 = vmul.f32 %v84_v5, %v22_v6  ;;  %v54_v17 = vmul.f32 %v87_v11, %v48_v7 }
  0x84   :  { %v33_v15 = vadd.f32 %v85_v9, %v28_v8 }
  0x86   :  { %v37_v12 = vpop.permute.xlu0 %36  ;;  %v59_v14 = vpop.permute.xlu1 %58 }
  0x87   :  { %v43_v16 = vmul.f32 %v86_v10, %v37_v12  ;;  %v65_v19 = vmul.f32 %v88_v13, %v59_v14 }
  0x89   :  { %v44_v18 = vadd.f32 %v43_v16, %v33_v15 }
  0x8b   :  { %v55_v20 = vadd.f32 %v54_v17, %v44_v18 }
  0x8d   :  { %v66_v21 = vadd.f32 %v65_v19, %v55_v20 }
  0x8f   :  { %v67_v23 = vmax.f32 %v66_v21, 0.0 }
  0x91   :  { %v72_v24 = vmul.f32 %v89_v22, %v67_v23 }
  0x93   :  { %73 = vadd.xlane.f32.xlu1 %v72_v24 }
 0x120   :  { %v74_v26 = vpop.xlane.xlu1 %73 }
 0x121   :  { %v77_v27 = vadd.f32 %v76_v25, %v74_v26 }
 0x123   :  { %79 = vst.msk [vmem:[%s153_s3] sm:$0xff] %vm78_vm0, %v77_v27 }

</bundles_post_ra>
